<compile_context>
chip_gen: v7x
topology: tpu7x:2x2x1
jax: 0.10.0
libtpu: 0.0.40
codegen_flags: <defaults>
</compile_context>

<pallas_src>
import functools
import math

import jax
import jax.numpy as jnp
from jax.experimental import pallas as pl
from jax.experimental.pallas import tpu as pltpu


# ---------------------------------------------------------------------------
# Kernel
# ---------------------------------------------------------------------------
def _mlp_kernel(layer_dims, row_offsets, x_ref, p_ref, out_ref):
    """One batch tile of the full MLP forward.

    x_ref   : (TB, inputs)     activation tile for this grid step
    p_ref   : (R, C)           packed params (replicated, fetched once)
    out_ref : (TB, C)          lane-dense output tile (C = 128-padded)
    layer_dims / row_offsets are static Python tuples (closed over).
    Layer i occupies rows [row_offsets[i], row_offsets[i] + fan_in] of p_ref:
    fan_in rows of W followed by one bias row; padded cols/rows are zero.
    """
    n_layers = len(layer_dims) - 1
    out_cols = out_ref.shape[-1]
    h = x_ref[...].astype(jnp.float32)
    for i in range(n_layers):
        fan_in = layer_dims[i]
        # Last layer writes the full lane-padded width (padded cols are zero),
        # so the final store is an unmasked, lane-dense vst.
        fan_out = layer_dims[i + 1] if i < n_layers - 1 else out_cols
        r = row_offsets[i]
        b = p_ref[r + fan_in:r + fan_in + 1, :fan_out]          # (1, fan_out)
        if fan_in <= 8:
            # Skinny contraction on the VPU: fan_in broadcast-multiply-adds
            # instead of an MXU pass that would use <4% of the systolic array.
            acc = h[:, 0:1] * p_ref[r:r + 1, :fan_out]
            for k in range(1, fan_in):
                acc = acc + h[:, k:k + 1] * p_ref[r + k:r + k + 1, :fan_out]
            h = acc + b
        else:
            w = p_ref[r:r + fan_in, :fan_out]                   # (fan_in, fan_out)
            h = jnp.dot(h, w, preferred_element_type=jnp.float32) + b
        if i < n_layers - 1:                                    # last layer: no ReLU
            h = jnp.maximum(h, 0.0)
    out_ref[...] = h.astype(out_ref.dtype)


# ---------------------------------------------------------------------------
# Tile selection
# ---------------------------------------------------------------------------
def _num_tensorcores():
    try:
        return max(1, int(getattr(jax.devices()[0], "num_cores", 1) or 1))
    except Exception:
        return 1


def _choose_tile(batch, block_batch):
    """Rows per grid step. One step on single-TC chips (v5e/v6e); >=2 even
    steps when the chip has 2 TensorCores (v7x). Always a multiple of 8."""
    rows8 = max(8, ((batch + 7) // 8) * 8)
    if block_batch is None:
        n_tc = _num_tensorcores()
        tb = (rows8 + n_tc - 1) // n_tc
        tb = max(8, ((tb + 7) // 8) * 8)
        tb = min(tb, 2048)                 # cap single-step tile size
    else:
        tb = max(8, (min(int(block_batch), rows8) // 8) * 8)
    return tb


# ---------------------------------------------------------------------------
# Wrapper (jitted: one dispatch for pallas_call + output column slice)
# ---------------------------------------------------------------------------
@functools.partial(jax.jit,
                   static_argnames=("layer_dims", "row_offsets", "block_batch"))
def deepq_forward(state, packed_params, layer_dims, row_offsets,
                  block_batch=None):
    """Pallas forward pass.

    state         : (batch, inputs) float32
    packed_params : (R, 128) float32 buffer from pack_deepq_params
    layer_dims    : tuple (inputs, *nodes, outputs)   [static]
    row_offsets   : tuple, 8-aligned row offset per layer [static]
    block_batch   : optional rows per grid step (rounded to a multiple of 8).
    """
    batch, inputs = state.shape
    outputs = layer_dims[-1]
    cols = packed_params.shape[1]

    tb = _choose_tile(batch, block_batch)
    grid = (pl.cdiv(batch, tb),)           # ragged tail block: OOB rows are
                                           # read as garbage and never written

    flops = 2 * batch * sum(a * b for a, b in zip(layer_dims[:-1], layer_dims[1:]))
    bytes_accessed = 4 * (batch * inputs + packed_params.size + batch * cols)

    out = pl.pallas_call(
        functools.partial(_mlp_kernel, tuple(layer_dims), tuple(row_offsets)),
        out_shape=jax.ShapeDtypeStruct((batch, cols), jnp.float32),
        grid_spec=pltpu.PrefetchScalarGridSpec(
            num_scalar_prefetch=0,
            grid=grid,
            in_specs=[
                pl.BlockSpec((tb, inputs), lambda i: (i, 0)),          # state
                # Constant index map -> the replicated param buffer is only
                # DMA'd once even though it is nominally double-buffered.
                pl.BlockSpec(packed_params.shape, lambda i: (0, 0)),   # params
            ],
            out_specs=pl.BlockSpec((tb, cols), lambda i: (i, 0)),
        ),
        compiler_params=pltpu.CompilerParams(
            # Independent batch axis: shards grid steps across both TCs on
            # v7x (no-op on single-TC v5e/v6e).
            dimension_semantics=("parallel",),
        ),
        cost_estimate=pl.CostEstimate(
            flops=flops, transcendentals=0, bytes_accessed=bytes_accessed),
    )(state, packed_params)

    return out[:, :outputs]


# ---------------------------------------------------------------------------
# Param init / packing
# ---------------------------------------------------------------------------
def init_deepq_params(key, inputs, nodes, outputs):
    """Deterministic init mirroring torch.nn.Linear defaults:
    W, b ~ U(-1/sqrt(fan_in), 1/sqrt(fan_in)). Weights stored as (in, out)."""
    dims = [inputs] + list(nodes) + [outputs]
    params = []
    for fan_in, fan_out in zip(dims[:-1], dims[1:]):
        key, kw, kb = jax.random.split(key, 3)
        bound = 1.0 / math.sqrt(fan_in)
        w = jax.random.uniform(kw, (fan_in, fan_out), jnp.float32, -bound, bound)
        b = jax.random.uniform(kb, (1, fan_out), jnp.float32, -bound, bound)
        params.append((w, b))
    return params, tuple(dims)


def pack_deepq_params(params, lane_pad=128):
    """Pack all (W, b) into one lane-padded f32 buffer (single DMA per call).

    Layer i occupies rows [off_i, off_i + fan_in]: fan_in rows of W then one
    bias row.  Columns padded to a multiple of 128; each layer block padded to
    a multiple of 8 rows so static slices never straddle an (8,128) tile.
    # TODO(synk): store params/state in bf16 (keep f32 MXU accumulation and
    # f32 elementwise on v5e) if this ever feeds large-batch replay inference.
    """
    max_out = max(w.shape[1] for w, _ in params)
    cols = ((max_out + lane_pad - 1) // lane_pad) * lane_pad
    blocks, row_offsets, r = [], [], 0
    for w, b in params:
        fan_in, fan_out = w.shape
        row_offsets.append(r)
        rows = ((fan_in + 1 + 7) // 8) * 8          # 8-row aligned layer block
        blk = jnp.zeros((rows, cols), jnp.float32)
        blk = blk.at[:fan_in, :fan_out].set(w.astype(jnp.float32))
        blk = blk.at[fan_in, :fan_out].set(b.reshape(-1).astype(jnp.float32))
        blocks.append(blk)
        r += rows
    packed = jnp.concatenate(blocks, axis=0)
    return packed, tuple(row_offsets)


# ---------------------------------------------------------------------------
# Pure-JAX reference
# ---------------------------------------------------------------------------
def deepq_forward_ref(state, params):
    h = state
    for i, (w, b) in enumerate(params):
        h = h @ w + b
        if i < len(params) - 1:
            h = jnp.maximum(h, 0.0)
    return h


# NOTE: DeepQ.action / learn / remember / memorize are host-side RL
# bookkeeping (replay buffer, epsilon-greedy, optimizer step) with no Pallas
# equivalent; only forward() is implemented as a kernel.

if __name__ == "__main__":
    key = jax.random.PRNGKey(0)

    # Cart-pole sized network: 4 observations -> [25] hidden -> 2 actions.
    batch, inputs, nodes, outputs = 8, 4, [25], 2

    key, kparam, kstate, kbig = jax.random.split(key, 4)
    params, layer_dims = init_deepq_params(kparam, inputs, nodes, outputs)
    packed, row_offsets = pack_deepq_params(params)

    # Small batch (single grid step).
    state = jax.random.normal(kstate, (batch, inputs), jnp.float32)
    out = jax.block_until_ready(
        deepq_forward(state, packed, layer_dims, row_offsets))
    ref = deepq_forward_ref(state, params)
    assert out.shape == (batch, outputs)
    assert jnp.allclose(out, ref, atol=1e-5, rtol=1e-5), "mismatch (small batch)"

    # Larger, non-multiple batch: exercises the ragged-tail grid path.
    big_batch = 1037
    big_state = jax.random.normal(kbig, (big_batch, inputs), jnp.float32)
    big_out = jax.block_until_ready(
        deepq_forward(big_state, packed, layer_dims, row_offsets))
    big_ref = deepq_forward_ref(big_state, params)
    assert big_out.shape == (big_batch, outputs)
    assert jnp.allclose(big_out, big_ref, atol=1e-5, rtol=1e-5), "mismatch (big batch)"

    # Explicit multi-step grid (forces >1 grid step + ragged tail).
    multi_out = jax.block_until_ready(
        deepq_forward(big_state, packed, layer_dims, row_offsets,
                      block_batch=512))
    assert jnp.allclose(multi_out, big_ref, atol=1e-5, rtol=1e-5), "mismatch (multi-step)"

    print("KERNEL_OK")
</pallas_src>

<mosaic_0001>
module attributes {stable_mosaic.version = 11 : i64} {
  func.func @_mlp_kernel(%arg0: i32, %arg1: memref<8x4xf32, #tpu.memory_space<vmem>>, %arg2: memref<40x128xf32, #tpu.memory_space<vmem>>, %arg3: memref<8x128xf32, #tpu.memory_space<vmem>>) attributes {dimension_semantics = [#tpu.dimension_semantics<parallel>], iteration_bounds = array<i64: 1>, scalar_prefetch = 0 : i64, scratch_operands = 0 : i64, tpu.core_type = #tpu.core_type<tc>, window_params = [{transform_indices = @transform_0, window_bounds = array<i64: 8, 4>}, {pipeline_mode = #tpu.pipeline_mode<synchronous>, transform_indices = @transform_1, window_bounds = array<i64: 40, 128>}, {transform_indices = @transform_2, window_bounds = array<i64: 8, 128>}]} {
    %c0 = arith.constant 0 : index
    %c0_0 = arith.constant 0 : index
    %0 = vector.load %arg1[%c0, %c0_0] : memref<8x4xf32, #tpu.memory_space<vmem>>, vector<8x4xf32>
    %c4 = arith.constant 4 : index
    %c0_1 = arith.constant 0 : index
    %1 = vector.load %arg2[%c4, %c0_1] : memref<40x128xf32, #tpu.memory_space<vmem>>, vector<1x25xf32>
    %2 = vector.extract_strided_slice %0 {offsets = [0, 0], sizes = [8, 1], strides = [1, 1]} : vector<8x4xf32> to vector<8x1xf32>
    %c0_2 = arith.constant 0 : index
    %c0_3 = arith.constant 0 : index
    %3 = vector.load %arg2[%c0_2, %c0_3] : memref<40x128xf32, #tpu.memory_space<vmem>>, vector<1x25xf32>
    %4 = vector.broadcast %2 : vector<8x1xf32> to vector<8x25xf32>
    %5 = vector.broadcast %3 : vector<1x25xf32> to vector<8x25xf32>
    %6 = arith.mulf %4, %5 : vector<8x25xf32>
    %7 = vector.extract_strided_slice %0 {offsets = [0, 1], sizes = [8, 1], strides = [1, 1]} : vector<8x4xf32> to vector<8x1xf32>
    %c1 = arith.constant 1 : index
    %c0_4 = arith.constant 0 : index
    %8 = vector.load %arg2[%c1, %c0_4] : memref<40x128xf32, #tpu.memory_space<vmem>>, vector<1x25xf32>
    %9 = vector.broadcast %7 : vector<8x1xf32> to vector<8x25xf32>
    %10 = vector.broadcast %8 : vector<1x25xf32> to vector<8x25xf32>
    %11 = arith.mulf %9, %10 : vector<8x25xf32>
    %12 = arith.addf %6, %11 : vector<8x25xf32>
    %13 = vector.extract_strided_slice %0 {offsets = [0, 2], sizes = [8, 1], strides = [1, 1]} : vector<8x4xf32> to vector<8x1xf32>
    %c2 = arith.constant 2 : index
    %c0_5 = arith.constant 0 : index
    %14 = vector.load %arg2[%c2, %c0_5] : memref<40x128xf32, #tpu.memory_space<vmem>>, vector<1x25xf32>
    %15 = vector.broadcast %13 : vector<8x1xf32> to vector<8x25xf32>
    %16 = vector.broadcast %14 : vector<1x25xf32> to vector<8x25xf32>
    %17 = arith.mulf %15, %16 : vector<8x25xf32>
    %18 = arith.addf %12, %17 : vector<8x25xf32>
    %19 = vector.extract_strided_slice %0 {offsets = [0, 3], sizes = [8, 1], strides = [1, 1]} : vector<8x4xf32> to vector<8x1xf32>
    %c3 = arith.constant 3 : index
    %c0_6 = arith.constant 0 : index
    %20 = vector.load %arg2[%c3, %c0_6] : memref<40x128xf32, #tpu.memory_space<vmem>>, vector<1x25xf32>
    %21 = vector.broadcast %19 : vector<8x1xf32> to vector<8x25xf32>
    %22 = vector.broadcast %20 : vector<1x25xf32> to vector<8x25xf32>
    %23 = arith.mulf %21, %22 : vector<8x25xf32>
    %24 = arith.addf %18, %23 : vector<8x25xf32>
    %25 = vector.broadcast %1 : vector<1x25xf32> to vector<8x25xf32>
    %26 = arith.addf %24, %25 : vector<8x25xf32>
    %cst = arith.constant 0.000000e+00 : f32
    %27 = vector.broadcast %cst : f32 to vector<8x25xf32>
    %28 = arith.maximumf %26, %27 : vector<8x25xf32>
    %c33 = arith.constant 33 : index
    %c0_7 = arith.constant 0 : index
    %29 = vector.load %arg2[%c33, %c0_7] : memref<40x128xf32, #tpu.memory_space<vmem>>, vector<1x128xf32>
    %c8 = arith.constant 8 : index
    %c0_8 = arith.constant 0 : index
    %30 = vector.load %arg2[%c8, %c0_8] : memref<40x128xf32, #tpu.memory_space<vmem>>, vector<25x128xf32>
    %cst_9 = arith.constant dense<0.000000e+00> : vector<8x128xf32>
    %31 = tpu.matmul %28, %30, %cst_9 {dimension_numbers = #tpu.dot_dimension_numbers<[1], [0], [0], [1], [0, 0, 1, 1], [], []>} : vector<8x25xf32>, vector<25x128xf32>, vector<8x128xf32> -> vector<8x128xf32>
    %32 = vector.broadcast %29 : vector<1x128xf32> to vector<8x128xf32>
    %33 = arith.addf %31, %32 : vector<8x128xf32>
    %c0_10 = arith.constant 0 : index
    %c0_11 = arith.constant 0 : index
    %34 = vector.load %arg3[%c0_10, %c0_11] : memref<8x128xf32, #tpu.memory_space<vmem>>, vector<8x128xf32>
    tpu.vector_store %arg3[%c0_10, %c0_11], %33 {strides = array<i32>} : memref<8x128xf32, #tpu.memory_space<vmem>>, vector<8x128xf32>,
    return
  }
  func.func @transform_0(%arg0: i32) -> (i32, i32) {
    %c0_i32 = arith.constant 0 : i32
    %c0_i32_0 = arith.constant 0 : i32
    return %arg0, %c0_i32 : i32, i32
  }
  func.func @transform_1(%arg0: i32) -> (i32, i32) {
    %c0_i32 = arith.constant 0 : i32
    %c0_i32_0 = arith.constant 0 : i32
    %c0_i32_1 = arith.constant 0 : i32
    return %c0_i32, %c0_i32_0 : i32, i32
  }
  func.func @transform_2(%arg0: i32) -> (i32, i32) {
    %c0_i32 = arith.constant 0 : i32
    %c0_i32_0 = arith.constant 0 : i32
    return %arg0, %c0_i32 : i32, i32
  }
}

</mosaic_0001>

<bundles_post_ra>
// kernel: deepq_forward.1
= control target key start
LH: loop header
LB: loop body
LE: loop exit
PB: predicated region body
PF: predicated region fallthrough
CT: control target
= control target key end

     0   :  { %7 = vsyncpa [#allocation3], 0  ;;  %s241_s9 = smov [#allocation2]   ;;  %s285_s0 = inlined_call_operand.vmem [shape: f32[8,4], index: 0, kind: input, shape index: {}]   ;;  %s286_s1 = inlined_call_operand.hbm [shape: f32[40,128], index: 1, kind: input, shape index: {}]   ;;  %s287_s2 = inlined_call_operand.vmem [shape: f32[8,128], index: 2, kind: output, shape index: {}]  }
   0x1   :  { %s15_s10 = sshll.u32 %s241_s9, 4  ;;  %s217_s13 = scalar_lea.hbm %s286_s1, 640  ;;  %s16_s10 = int_to_ptr.vmem [resolvable:$true] %s15_s10 }
   0x2   :  { %p218_p0 = scmp.ne.s32.totalorder %s286_s1, %s217_s13  ;;  %p221_p1 = scmp.lt.u32.totalorder %s217_s13, %s286_s1 }
   0x4   :  { %p223_p2 = pnand %p221_p1, %p218_p0 }
   0x6   :  { %226 = shalt.err (!%p223_p2)
}
   0x7   :  { %s227_s18 = scalar_lea.vmem %s16_s10, 640  ;;  %p232_p4 = scmp.lt.s32.totalorder %s16_s10, %s16_s10 }
   0x8   :  { %p228_p3 = scmp.ne.s32.totalorder %s16_s10, %s227_s18  ;;  %p233_p5 = scmp.lt.s32.totalorder %s227_s18, %s227_s18 }
   0xa   :  { %p234_p6 = por %p233_p5, %p232_p4 }
   0xc   :  { %p235_p7 = pnand %p234_p6, %p228_p3 }
   0xe   :  { %238 = shalt.err (!%p235_p7)
}
   0xf   :  { %s242_s19 = smov 128   ;;  %s243_s20 = smov 8  }
  0x10   :  { %21 = dma.hbm_to_vmem [thread:$0]  %s286_s1, 640, %s16_s10, [#allocation3], %s242_s19, %s242_s19, %s243_s20  }
  0x11   :  { %239 = dma.done.wait [#allocation3], 640  }
  0x12   :  { %240 = vsyncadd [#allocation3], 4294966656  ;;  %v244_v0 = vmov 0   ;;  %v245_v1 = vmov 2   ;;  %v25_v2 = vld [vmem:[%s285_s0] sm:$0xff]  ;;  %v246_v3 = vmov 1  }
  0x13   :  { %212 = vset.pattern.permute.xlu0 %v244_v0  ;;  %214 = vset.pattern.permute.xlu1 %v245_v1  ;;  %v247_v4 = vmov 3   ;;  %v78_v5 = vld [vmem:[#allocation2 + $0x8] sm:$0xff]  ;;  %v79_v6 = vld [vmem:[#allocation2 + $0x10] sm:$0xff]  ;;  %v248_v7 = vmov 0.0|0.0   ;;  %v80_v9 = vld [vmem:[#allocation2 + $0x18] sm:$0xff]  ;;  %vm90_vm0 = vcmask 1040384  }
  0x14   :  { %30 = vperm.xlu0 %212, %v25_v2   ;;  %51 = vperm.xlu1 %214, %v25_v2   ;;  %v195_v8 = vpack.c.bf16 %v79_v6, %v78_v5  ;;  %v81_v10 = vld [vmem:[#allocation2 + $0x20] sm:$0x1]  ;;  %vm249_vm1 = vmmov 1   ;;  %vm250_vm3 = vmmov 0   ;;  %v251_v12 = vmov 0.0  }
  0x15   :  { %194 = vmatprep.subr.bf16.mxu0 %v248_v7  ;;  %v198_v11 = vpack.c.bf16 %v81_v10, %v80_v9  ;;  %vm199_vm2 = vmpackc.low %vm90_vm0, %vm249_vm1  ;;  %191 = vmatprep.mubr.msk.f32.mxu0 %vm250_vm3, %v251_v12  ;;  %v170_v15 = vld [vmem:[#allocation2] ss:$0 sm:$0xff]  ;;  %v171_v16 = vld [vmem:[#allocation2 + $0x1] ss:$0 sm:$0xff]  ;;  %vm86_vm4 = vcmask 203776  }
  0x16   :  { %196 = vmatpush3.bf16.msra.mxu0 %v195_v8  ;;  %v172_v17 = vld [vmem:[#allocation2 + $0x2] ss:$0 sm:$0xff]  ;;  %v173_v19 = vld [vmem:[#allocation2 + $0x3] ss:$0 sm:$0xff]  ;;  %v174_v27 = vld [vmem:[#allocation2 + $0x4] ss:$0 sm:$0xff] }
  0x17   :  { %197 = vmatprep.subr.bf16.mxu0 %v248_v7  ;;  %v175_v31 = vld [vmem:[#allocation2 + $0x21] ss:$0 sm:$0xff] }
  0x18   :  { %213 = vset.pattern.permute.xlu0 %v246_v3  ;;  %215 = vset.pattern.permute.xlu1 %v247_v4 }
  0x19   :  { %40 = vperm.xlu0 %213, %v25_v2   ;;  %62 = vperm.xlu1 %215, %v25_v2  }
  0x1a   :  { %200 = vmatpush3.bf16.msk.msra.mxu0 %vm199_vm2, %v198_v11 }
  0x1d   :  { %216 = vset.pattern.permute.xlu0 %v247_v4 }
  0x93   :  { %v31_v13 = vpop.permute.xlu0 %30  ;;  %v52_v14 = vpop.permute.xlu1 %51 }
  0x94   :  { %v37_v21 = vmul.f32 %v170_v15, %v31_v13  ;;  %v58_v23 = vmul.f32 %v172_v17, %v52_v14 }
  0x98   :  { %v41_v18 = vpop.permute.xlu0 %40  ;;  %v63_v20 = vpop.permute.xlu1 %62 }
  0x99   :  { %v47_v22 = vmul.f32 %v171_v16, %v41_v18  ;;  %v69_v25 = vmul.f32 %v173_v19, %v63_v20 }
  0x9b   :  { %v48_v24 = vadd.f32 %v47_v22, %v37_v21 }
  0x9d   :  { %v59_v26 = vadd.f32 %v58_v23, %v48_v24 }
  0x9f   :  { %v70_v28 = vadd.f32 %v69_v25, %v59_v26 }
  0xa1   :  { %v75_v29 = vadd.f32 %v174_v27, %v70_v28 }
  0xa3   :  { %v76_v30 = vmax.f32 %v75_v29, 0.0 }
  0xa5   :  { %192 = vmatmul.mubr.msk.f32.vlgmr.msra.gmra.mrb[0].mxu0 %vm86_vm4, %v76_v30 }
 0x178   :  { %v160_v32 = vpop.f32.mrb[0].mxu0 }
 0x179   :  { %v161_v33 = vadd.f32 %v175_v31, %v160_v32  ;;  %v193_v34 = vpop.f32.mrb[1].mxu0 }
 0x17b   :  { %164 = vst [vmem:[%s287_s2] sm:$0xff] %v161_v33 }
 0x17c   :  { %169 = vsyncpa [#allocation3], 1 }

</bundles_post_ra>
